<compile_context>
chip_gen: v7x
topology: tpu7x:2x2x1
jax: 0.10.0
libtpu: 0.0.40
codegen_flags: <defaults>
</compile_context>

<pallas_src>
import functools

import jax
import jax.numpy as jnp
from jax.experimental import pallas as pl
from jax.experimental.pallas import tpu as pltpu


def _round_up(x, m):
    return (x + m - 1) // m * m


def dueling_dqn_kernel(x_ref, w1_ref, b1_ref, w2_ref, b2_ref,
                       wh1_ref, bh1_ref, wh2_ref, bh2_ref, q_ref,
                       *, actions, inv_actions):
    bf16 = jnp.bfloat16

    # ---- feature trunk: Linear+ReLU x2 (bf16 MXU inputs, f32 accumulate) ----
    h = jnp.dot(x_ref[...], w1_ref[...],
                preferred_element_type=jnp.float32) + b1_ref[...]
    h = jnp.maximum(h, 0.0)
    h = jnp.dot(h.astype(bf16), w2_ref[...],
                preferred_element_type=jnp.float32) + b2_ref[...]
    h = jnp.maximum(h, 0.0)

    # ---- fused head first layer: value hidden in lanes [0, H),
    #      advantage hidden in lanes [H, 2H), zeros elsewhere ----
    h12 = jnp.dot(h.astype(bf16), wh1_ref[...],
                  preferred_element_type=jnp.float32) + bh1_ref[...]
    h12 = jnp.maximum(h12, 0.0)

    # ---- fused head second layer (block-packed columns):
    #        [0, A)   advantage logits
    #        A        sum of advantage logits (precomputed MXU column)
    #        A + 1    value
    #        rest     exactly zero (zero weights + zero bias) ----
    out2 = jnp.dot(h12.astype(bf16), wh2_ref[...],
                   preferred_element_type=jnp.float32) + bh2_ref[...]

    adv_sum = out2[:, actions:actions + 1]        # (TB, 1) -- no XLU reduce
    v = out2[:, actions + 1:actions + 2]          # (TB, 1) value
    # q = value + advantage - mean(advantage). Columns >= A hold garbage that
    # the wrapper slices off; consumers must never read the padded lanes.
    q_ref[...] = (out2 + v - adv_sum * inv_actions).astype(q_ref.dtype)


def dueling_dqn_forward(x, params, *, block_batch=512):
    """x: (B, state_dim). params: (in, out) weights and (1, out) biases."""
    B, S = x.shape
    H = params["w1"].shape[1]
    A = params["wa2"].shape[1]

    f32, bf16 = jnp.float32, jnp.bfloat16

    H_pad = _round_up(H, 128)            # trunk hidden lanes
    HH = _round_up(2 * H, 128)           # fused head-hidden lanes (1 group if 2H<=128)
    A_out = _round_up(A + 2, 128)        # advantages | adv-sum | value | zeros

    # Batch tile: keep >= 2 grid steps (v7x has 2 TCs), multiple of 16 (bf16
    # sublane tile for the pre-cast x), capped at block_batch (mult. of 256).
    TB = min(block_batch, max(16, _round_up(-(-B // 2), 16)))
    B_pad = _round_up(B, TB)

    # ---- pack / pad weights (lane dims -> x128, MXU weights -> bf16) ----
    def pad2(a, rows, cols):
        r, c = a.shape
        return jnp.pad(a, ((0, rows - r), (0, cols - c)))

    w1 = pad2(params["w1"], S, H_pad).astype(bf16)       # feature dim stays real
    b1 = pad2(params["b1"], 1, H_pad).astype(f32)
    w2 = pad2(params["w2"], H_pad, H_pad).astype(bf16)
    b2 = pad2(params["b2"], 1, H_pad).astype(f32)

    # fused head first layer: value -> lanes [0, H), advantage -> lanes [H, 2H)
    wh1 = jnp.zeros((H_pad, HH), f32)
    wh1 = wh1.at[:H, :H].set(params["wv1"])
    wh1 = wh1.at[:H, H:2 * H].set(params["wa1"])
    wh1 = wh1.astype(bf16)
    bh1 = jnp.zeros((1, HH), f32)
    bh1 = bh1.at[:, :H].set(params["bv1"])
    bh1 = bh1.at[:, H:2 * H].set(params["ba1"])

    # fused head second layer: advantage rows [H, 2H), value rows [0, H)
    wh2 = jnp.zeros((HH, A_out), f32)
    wh2 = wh2.at[H:2 * H, :A].set(params["wa2"])
    wh2 = wh2.at[H:2 * H, A:A + 1].set(
        params["wa2"].sum(axis=1, keepdims=True))         # adv-sum column
    wh2 = wh2.at[:H, A + 1:A + 2].set(params["wv2"])       # value column
    wh2 = wh2.astype(bf16)
    bh2 = jnp.zeros((1, A_out), f32)
    bh2 = bh2.at[:, :A].set(params["ba2"])
    bh2 = bh2.at[:, A].set(params["ba2"].sum())
    bh2 = bh2.at[:, A + 1].set(params["bv2"][0, 0])

    weights = (w1, b1, w2, b2, wh1, bh1, wh2, bh2)

    # x: cast to bf16 where it is materialized anyway (batch pad); the feature
    # dim is NOT padded, so the streamed DMA only carries real bf16 bytes.
    x_bf = jnp.pad(x.astype(bf16), ((0, B_pad - B), (0, 0)))

    # ---- VMEM budget: single-buffered resident weights + double-buffered io
    #      tiles (bf16 x, f32 q) + activation temps; generation-aware cap. ----
    resident = sum(int(a.size) * a.dtype.itemsize for a in weights)
    io_tiles = 2 * (TB * S * 2 + TB * A_out * 4)
    act = TB * (2 * H_pad + HH + A_out) * 4 + TB * (2 * H_pad + HH) * 2
    try:
        phys = int(pltpu.get_tpu_info().vmem_capacity_bytes)
    except Exception:
        phys = 64 << 20                       # conservative (v7x) fallback
    cap = max(16 << 20, phys - (16 << 20))    # leave >=16 MiB headroom
    vmem_limit = int(min(cap, max(16 << 20,
                                  resident + io_tiles + act + (8 << 20))))

    kernel = functools.partial(dueling_dqn_kernel,
                               actions=A, inv_actions=1.0 / A)

    def run(single_buffer_weights):
        def wspec(shape):
            if single_buffer_weights:
                # constant index_map -> weight stays VMEM-resident; a single
                # buffer avoids a wasted second copy (matters on v7x 64 MiB).
                return pl.BlockSpec(shape, lambda i: (0, 0),
                                    pipeline_mode=pl.Buffered(1))
            return pl.BlockSpec(shape, lambda i: (0, 0))

        return pl.pallas_call(
            kernel,
            out_shape=jax.ShapeDtypeStruct((B_pad, A_out), f32),
            grid=(B_pad // TB,),
            in_specs=[pl.BlockSpec((TB, S), lambda i: (i, 0))]
                     + [wspec(w.shape) for w in weights],
            out_specs=pl.BlockSpec((TB, A_out), lambda i: (i, 0)),
            compiler_params=pltpu.CompilerParams(
                dimension_semantics=("parallel",),
                vmem_limit_bytes=vmem_limit),
        )(x_bf, *weights)

    try:
        q_pad = run(single_buffer_weights=True)
    except Exception:
        # Graceful fallback to default double-buffered weights if Buffered(1)
        # is rejected by this JAX/Mosaic build.
        q_pad = run(single_buffer_weights=False)

    # NOTE: columns >= A of q_pad are garbage (value / adv-sum lanes mixed into
    # the combine); always slice before any downstream argmax/masking.
    return q_pad[:B, :A]


def init_params(key, state_dim, actions_dim, hidden_dim):
    """Deterministic synthetic params. Weights stored pre-transposed as (in, out)."""
    shapes = {
        "w1": (state_dim, hidden_dim),   "b1": (1, hidden_dim),
        "w2": (hidden_dim, hidden_dim),  "b2": (1, hidden_dim),
        "wv1": (hidden_dim, hidden_dim), "bv1": (1, hidden_dim),
        "wv2": (hidden_dim, 1),          "bv2": (1, 1),
        "wa1": (hidden_dim, hidden_dim), "ba1": (1, hidden_dim),
        "wa2": (hidden_dim, actions_dim), "ba2": (1, actions_dim),
    }
    params = {}
    keys = jax.random.split(key, len(shapes))
    for k, (name, shp) in zip(keys, shapes.items()):
        params[name] = (0.1 * jax.random.normal(k, shp)).astype(jnp.float32)
    return params


def reference_forward(x, p):
    """Plain-JAX f32 reference with the original module's semantics."""
    h = jax.nn.relu(x @ p["w1"] + p["b1"])
    h = jax.nn.relu(h @ p["w2"] + p["b2"])
    v = jax.nn.relu(h @ p["wv1"] + p["bv1"]) @ p["wv2"] + p["bv2"]
    a = jax.nn.relu(h @ p["wa1"] + p["ba1"]) @ p["wa2"] + p["ba2"]
    return v + a - a.mean(axis=1, keepdims=True)


def reference_forward_bf16(x, p):
    """Reference emulating the kernel's bf16-MXU / f32-accumulate numerics,
    including the advantage-sum-as-extra-MXU-column trick."""
    bf = jnp.bfloat16
    A = p["wa2"].shape[1]

    def mm(a, b):
        return jnp.dot(a.astype(bf), b.astype(bf),
                       preferred_element_type=jnp.float32)

    h = jax.nn.relu(mm(x, p["w1"]) + p["b1"])
    h = jax.nn.relu(mm(h, p["w2"]) + p["b2"])
    hv = jax.nn.relu(mm(h, p["wv1"]) + p["bv1"])
    ha = jax.nn.relu(mm(h, p["wa1"]) + p["ba1"])
    v = mm(hv, p["wv2"]) + p["bv2"]
    a = mm(ha, p["wa2"]) + p["ba2"]
    a_sum = mm(ha, p["wa2"].sum(axis=1, keepdims=True)) + p["ba2"].sum()
    return v + a - a_sum * (1.0 / A)


if __name__ == "__main__":
    batch, state_dim, actions_dim, hidden_dim = 2, 16, 8, 32

    key = jax.random.PRNGKey(0)
    kx, kp = jax.random.split(key)
    x = jax.random.normal(kx, (batch, state_dim), dtype=jnp.float32)
    params = init_params(kp, state_dim, actions_dim, hidden_dim)

    q = jax.block_until_ready(dueling_dqn_forward(x, params))
    assert q.shape == (batch, actions_dim)

    q_bf16 = reference_forward_bf16(x, params)
    q_f32 = reference_forward(x, params)
    assert jnp.allclose(q, q_bf16, atol=2e-3, rtol=2e-3), \
        float(jnp.max(jnp.abs(q - q_bf16)))
    assert jnp.allclose(q, q_f32, atol=5e-2, rtol=5e-2), \
        float(jnp.max(jnp.abs(q - q_f32)))

    print("KERNEL_OK")
</pallas_src>

<mosaic_0001>
module attributes {stable_mosaic.version = 11 : i64} {
  func.func @dueling_dqn_kernel(%arg0: i32, %arg1: memref<16x16xbf16, #tpu.memory_space<vmem>>, %arg2: memref<16x128xbf16, #tpu.memory_space<vmem>>, %arg3: memref<1x128xf32, #tpu.memory_space<vmem>>, %arg4: memref<128x128xbf16, #tpu.memory_space<vmem>>, %arg5: memref<1x128xf32, #tpu.memory_space<vmem>>, %arg6: memref<128x128xbf16, #tpu.memory_space<vmem>>, %arg7: memref<1x128xf32, #tpu.memory_space<vmem>>, %arg8: memref<128x128xbf16, #tpu.memory_space<vmem>>, %arg9: memref<1x128xf32, #tpu.memory_space<vmem>>, %arg10: memref<16x128xf32, #tpu.memory_space<vmem>>) attributes {dimension_semantics = [#tpu.dimension_semantics<parallel>], iteration_bounds = array<i64: 1>, scalar_prefetch = 0 : i64, scratch_operands = 0 : i64, tpu.core_type = #tpu.core_type<tc>, window_params = [{transform_indices = @transform_0, window_bounds = array<i64: 16, 16>}, {pipeline_mode = #tpu.pipeline_mode<synchronous>, transform_indices = @transform_1, window_bounds = array<i64: 16, 128>}, {pipeline_mode = #tpu.pipeline_mode<synchronous>, transform_indices = @transform_2, window_bounds = array<i64: 1, 128>}, {pipeline_mode = #tpu.pipeline_mode<synchronous>, transform_indices = @transform_3, window_bounds = array<i64: 128, 128>}, {pipeline_mode = #tpu.pipeline_mode<synchronous>, transform_indices = @transform_4, window_bounds = array<i64: 1, 128>}, {pipeline_mode = #tpu.pipeline_mode<synchronous>, transform_indices = @transform_5, window_bounds = array<i64: 128, 128>}, {pipeline_mode = #tpu.pipeline_mode<synchronous>, transform_indices = @transform_6, window_bounds = array<i64: 1, 128>}, {pipeline_mode = #tpu.pipeline_mode<synchronous>, transform_indices = @transform_7, window_bounds = array<i64: 128, 128>}, {pipeline_mode = #tpu.pipeline_mode<synchronous>, transform_indices = @transform_8, window_bounds = array<i64: 1, 128>}, {transform_indices = @transform_9, window_bounds = array<i64: 16, 128>}]} {
    %c0 = arith.constant 0 : index
    %c0_0 = arith.constant 0 : index
    %0 = vector.load %arg1[%c0, %c0_0] : memref<16x16xbf16, #tpu.memory_space<vmem>>, vector<16x16xbf16>
    %c0_1 = arith.constant 0 : index
    %c0_2 = arith.constant 0 : index
    %1 = vector.load %arg2[%c0_1, %c0_2] : memref<16x128xbf16, #tpu.memory_space<vmem>>, vector<16x128xbf16>
    %cst = arith.constant dense<0.000000e+00> : vector<16x128xf32>
    %2 = tpu.matmul %0, %1, %cst {dimension_numbers = #tpu.dot_dimension_numbers<[1], [0], [0], [1], [0, 0, 1, 1], [], []>} : vector<16x16xbf16>, vector<16x128xbf16>, vector<16x128xf32> -> vector<16x128xf32>
    %c0_3 = arith.constant 0 : index
    %c0_4 = arith.constant 0 : index
    %3 = vector.load %arg3[%c0_3, %c0_4] : memref<1x128xf32, #tpu.memory_space<vmem>>, vector<1x128xf32>
    %4 = vector.broadcast %3 : vector<1x128xf32> to vector<16x128xf32>
    %5 = arith.addf %2, %4 : vector<16x128xf32>
    %cst_5 = arith.constant 0.000000e+00 : f32
    %6 = vector.broadcast %cst_5 : f32 to vector<16x128xf32>
    %7 = arith.maximumf %5, %6 : vector<16x128xf32>
    %8 = arith.truncf %7 : vector<16x128xf32> to vector<16x128xbf16>
    %c0_6 = arith.constant 0 : index
    %c0_7 = arith.constant 0 : index
    %9 = vector.load %arg4[%c0_6, %c0_7] : memref<128x128xbf16, #tpu.memory_space<vmem>>, vector<128x128xbf16>
    %cst_8 = arith.constant dense<0.000000e+00> : vector<16x128xf32>
    %10 = tpu.matmul %8, %9, %cst_8 {dimension_numbers = #tpu.dot_dimension_numbers<[1], [0], [0], [1], [0, 0, 1, 1], [], []>} : vector<16x128xbf16>, vector<128x128xbf16>, vector<16x128xf32> -> vector<16x128xf32>
    %c0_9 = arith.constant 0 : index
    %c0_10 = arith.constant 0 : index
    %11 = vector.load %arg5[%c0_9, %c0_10] : memref<1x128xf32, #tpu.memory_space<vmem>>, vector<1x128xf32>
    %12 = vector.broadcast %11 : vector<1x128xf32> to vector<16x128xf32>
    %13 = arith.addf %10, %12 : vector<16x128xf32>
    %cst_11 = arith.constant 0.000000e+00 : f32
    %14 = vector.broadcast %cst_11 : f32 to vector<16x128xf32>
    %15 = arith.maximumf %13, %14 : vector<16x128xf32>
    %16 = arith.truncf %15 : vector<16x128xf32> to vector<16x128xbf16>
    %c0_12 = arith.constant 0 : index
    %c0_13 = arith.constant 0 : index
    %17 = vector.load %arg6[%c0_12, %c0_13] : memref<128x128xbf16, #tpu.memory_space<vmem>>, vector<128x128xbf16>
    %cst_14 = arith.constant dense<0.000000e+00> : vector<16x128xf32>
    %18 = tpu.matmul %16, %17, %cst_14 {dimension_numbers = #tpu.dot_dimension_numbers<[1], [0], [0], [1], [0, 0, 1, 1], [], []>} : vector<16x128xbf16>, vector<128x128xbf16>, vector<16x128xf32> -> vector<16x128xf32>
    %c0_15 = arith.constant 0 : index
    %c0_16 = arith.constant 0 : index
    %19 = vector.load %arg7[%c0_15, %c0_16] : memref<1x128xf32, #tpu.memory_space<vmem>>, vector<1x128xf32>
    %20 = vector.broadcast %19 : vector<1x128xf32> to vector<16x128xf32>
    %21 = arith.addf %18, %20 : vector<16x128xf32>
    %cst_17 = arith.constant 0.000000e+00 : f32
    %22 = vector.broadcast %cst_17 : f32 to vector<16x128xf32>
    %23 = arith.maximumf %21, %22 : vector<16x128xf32>
    %24 = arith.truncf %23 : vector<16x128xf32> to vector<16x128xbf16>
    %c0_18 = arith.constant 0 : index
    %c0_19 = arith.constant 0 : index
    %25 = vector.load %arg8[%c0_18, %c0_19] : memref<128x128xbf16, #tpu.memory_space<vmem>>, vector<128x128xbf16>
    %cst_20 = arith.constant dense<0.000000e+00> : vector<16x128xf32>
    %26 = tpu.matmul %24, %25, %cst_20 {dimension_numbers = #tpu.dot_dimension_numbers<[1], [0], [0], [1], [0, 0, 1, 1], [], []>} : vector<16x128xbf16>, vector<128x128xbf16>, vector<16x128xf32> -> vector<16x128xf32>
    %c0_21 = arith.constant 0 : index
    %c0_22 = arith.constant 0 : index
    %27 = vector.load %arg9[%c0_21, %c0_22] : memref<1x128xf32, #tpu.memory_space<vmem>>, vector<1x128xf32>
    %28 = vector.broadcast %27 : vector<1x128xf32> to vector<16x128xf32>
    %29 = arith.addf %26, %28 : vector<16x128xf32>
    %30 = vector.extract_strided_slice %29 {offsets = [0, 8], sizes = [16, 1], strides = [1, 1]} : vector<16x128xf32> to vector<16x1xf32>
    %31 = vector.extract_strided_slice %29 {offsets = [0, 9], sizes = [16, 1], strides = [1, 1]} : vector<16x128xf32> to vector<16x1xf32>
    %32 = vector.broadcast %31 : vector<16x1xf32> to vector<16x128xf32>
    %33 = arith.addf %29, %32 : vector<16x128xf32>
    %cst_23 = arith.constant 1.250000e-01 : f32
    %34 = vector.broadcast %cst_23 : f32 to vector<16x1xf32>
    %35 = arith.mulf %30, %34 : vector<16x1xf32>
    %36 = vector.broadcast %35 : vector<16x1xf32> to vector<16x128xf32>
    %37 = arith.subf %33, %36 : vector<16x128xf32>
    %c0_24 = arith.constant 0 : index
    %c0_25 = arith.constant 0 : index
    %38 = vector.load %arg10[%c0_24, %c0_25] : memref<16x128xf32, #tpu.memory_space<vmem>>, vector<16x128xf32>
    tpu.vector_store %arg10[%c0_24, %c0_25], %37 {strides = array<i32>} : memref<16x128xf32, #tpu.memory_space<vmem>>, vector<16x128xf32>,
    return
  }
  func.func @transform_0(%arg0: i32) -> (i32, i32) {
    %c0_i32 = arith.constant 0 : i32
    %c0_i32_0 = arith.constant 0 : i32
    return %arg0, %c0_i32 : i32, i32
  }
  func.func @transform_1(%arg0: i32) -> (i32, i32) {
    %c0_i32 = arith.constant 0 : i32
    %c0_i32_0 = arith.constant 0 : i32
    %c0_i32_1 = arith.constant 0 : i32
    return %c0_i32, %c0_i32_0 : i32, i32
  }
  func.func @transform_2(%arg0: i32) -> (i32, i32) {
    %c0_i32 = arith.constant 0 : i32
    %c0_i32_0 = arith.constant 0 : i32
    %c0_i32_1 = arith.constant 0 : i32
    return %c0_i32, %c0_i32_0 : i32, i32
  }
  func.func @transform_3(%arg0: i32) -> (i32, i32) {
    %c0_i32 = arith.constant 0 : i32
    %c0_i32_0 = arith.constant 0 : i32
    %c0_i32_1 = arith.constant 0 : i32
    return %c0_i32, %c0_i32_0 : i32, i32
  }
  func.func @transform_4(%arg0: i32) -> (i32, i32) {
    %c0_i32 = arith.constant 0 : i32
    %c0_i32_0 = arith.constant 0 : i32
    %c0_i32_1 = arith.constant 0 : i32
    return %c0_i32, %c0_i32_0 : i32, i32
  }
  func.func @transform_5(%arg0: i32) -> (i32, i32) {
    %c0_i32 = arith.constant 0 : i32
    %c0_i32_0 = arith.constant 0 : i32
    %c0_i32_1 = arith.constant 0 : i32
    return %c0_i32, %c0_i32_0 : i32, i32
  }
  func.func @transform_6(%arg0: i32) -> (i32, i32) {
    %c0_i32 = arith.constant 0 : i32
    %c0_i32_0 = arith.constant 0 : i32
    %c0_i32_1 = arith.constant 0 : i32
    return %c0_i32, %c0_i32_0 : i32, i32
  }
  func.func @transform_7(%arg0: i32) -> (i32, i32) {
    %c0_i32 = arith.constant 0 : i32
    %c0_i32_0 = arith.constant 0 : i32
    %c0_i32_1 = arith.constant 0 : i32
    return %c0_i32, %c0_i32_0 : i32, i32
  }
  func.func @transform_8(%arg0: i32) -> (i32, i32) {
    %c0_i32 = arith.constant 0 : i32
    %c0_i32_0 = arith.constant 0 : i32
    %c0_i32_1 = arith.constant 0 : i32
    return %c0_i32, %c0_i32_0 : i32, i32
  }
  func.func @transform_9(%arg0: i32) -> (i32, i32) {
    %c0_i32 = arith.constant 0 : i32
    %c0_i32_0 = arith.constant 0 : i32
    return %arg0, %c0_i32 : i32, i32
  }
}

module attributes {stable_mosaic.version = 11 : i64} {
  func.func @dueling_dqn_kernel(%arg0: i32, %arg1: memref<16x16xbf16, #tpu.memory_space<vmem>>, %arg2: memref<16x128xbf16, #tpu.memory_space<vmem>>, %arg3: memref<1x128xf32, #tpu.memory_space<vmem>>, %arg4: memref<128x128xbf16, #tpu.memory_space<vmem>>, %arg5: memref<1x128xf32, #tpu.memory_space<vmem>>, %arg6: memref<128x128xbf16, #tpu.memory_space<vmem>>, %arg7: memref<1x128xf32, #tpu.memory_space<vmem>>, %arg8: memref<128x128xbf16, #tpu.memory_space<vmem>>, %arg9: memref<1x128xf32, #tpu.memory_space<vmem>>, %arg10: memref<16x128xf32, #tpu.memory_space<vmem>>) attributes {dimension_semantics = [#tpu.dimension_semantics<parallel>], iteration_bounds = array<i64: 1>, scalar_prefetch = 0 : i64, scratch_operands = 0 : i64, tpu.core_type = #tpu.core_type<tc>, window_params = [{transform_indices = @transform_0, window_bounds = array<i64: 16, 16>}, {pipeline_mode = #tpu.pipeline_mode<synchronous>, transform_indices = @transform_1, window_bounds = array<i64: 16, 128>}, {pipeline_mode = #tpu.pipeline_mode<synchronous>, transform_indices = @transform_2, window_bounds = array<i64: 1, 128>}, {pipeline_mode = #tpu.pipeline_mode<synchronous>, transform_indices = @transform_3, window_bounds = array<i64: 128, 128>}, {pipeline_mode = #tpu.pipeline_mode<synchronous>, transform_indices = @transform_4, window_bounds = array<i64: 1, 128>}, {pipeline_mode = #tpu.pipeline_mode<synchronous>, transform_indices = @transform_5, window_bounds = array<i64: 128, 128>}, {pipeline_mode = #tpu.pipeline_mode<synchronous>, transform_indices = @transform_6, window_bounds = array<i64: 1, 128>}, {pipeline_mode = #tpu.pipeline_mode<synchronous>, transform_indices = @transform_7, window_bounds = array<i64: 128, 128>}, {pipeline_mode = #tpu.pipeline_mode<synchronous>, transform_indices = @transform_8, window_bounds = array<i64: 1, 128>}, {transform_indices = @transform_9, window_bounds = array<i64: 16, 128>}]} {
    %c0 = arith.constant 0 : index
    %c0_0 = arith.constant 0 : index
    %0 = vector.load %arg1[%c0, %c0_0] : memref<16x16xbf16, #tpu.memory_space<vmem>>, vector<16x16xbf16>
    %c0_1 = arith.constant 0 : index
    %c0_2 = arith.constant 0 : index
    %1 = vector.load %arg2[%c0_1, %c0_2] : memref<16x128xbf16, #tpu.memory_space<vmem>>, vector<16x128xbf16>
    %cst = arith.constant dense<0.000000e+00> : vector<16x128xf32>
    %2 = tpu.matmul %0, %1, %cst {dimension_numbers = #tpu.dot_dimension_numbers<[1], [0], [0], [1], [0, 0, 1, 1], [], []>} : vector<16x16xbf16>, vector<16x128xbf16>, vector<16x128xf32> -> vector<16x128xf32>
    %c0_3 = arith.constant 0 : index
    %c0_4 = arith.constant 0 : index
    %3 = vector.load %arg3[%c0_3, %c0_4] : memref<1x128xf32, #tpu.memory_space<vmem>>, vector<1x128xf32>
    %4 = vector.broadcast %3 : vector<1x128xf32> to vector<16x128xf32>
    %5 = arith.addf %2, %4 : vector<16x128xf32>
    %cst_5 = arith.constant 0.000000e+00 : f32
    %6 = vector.broadcast %cst_5 : f32 to vector<16x128xf32>
    %7 = arith.maximumf %5, %6 : vector<16x128xf32>
    %8 = arith.truncf %7 : vector<16x128xf32> to vector<16x128xbf16>
    %c0_6 = arith.constant 0 : index
    %c0_7 = arith.constant 0 : index
    %9 = vector.load %arg4[%c0_6, %c0_7] : memref<128x128xbf16, #tpu.memory_space<vmem>>, vector<128x128xbf16>
    %cst_8 = arith.constant dense<0.000000e+00> : vector<16x128xf32>
    %10 = tpu.matmul %8, %9, %cst_8 {dimension_numbers = #tpu.dot_dimension_numbers<[1], [0], [0], [1], [0, 0, 1, 1], [], []>} : vector<16x128xbf16>, vector<128x128xbf16>, vector<16x128xf32> -> vector<16x128xf32>
    %c0_9 = arith.constant 0 : index
    %c0_10 = arith.constant 0 : index
    %11 = vector.load %arg5[%c0_9, %c0_10] : memref<1x128xf32, #tpu.memory_space<vmem>>, vector<1x128xf32>
    %12 = vector.broadcast %11 : vector<1x128xf32> to vector<16x128xf32>
    %13 = arith.addf %10, %12 : vector<16x128xf32>
    %cst_11 = arith.constant 0.000000e+00 : f32
    %14 = vector.broadcast %cst_11 : f32 to vector<16x128xf32>
    %15 = arith.maximumf %13, %14 : vector<16x128xf32>
    %16 = arith.truncf %15 : vector<16x128xf32> to vector<16x128xbf16>
    %c0_12 = arith.constant 0 : index
    %c0_13 = arith.constant 0 : index
    %17 = vector.load %arg6[%c0_12, %c0_13] : memref<128x128xbf16, #tpu.memory_space<vmem>>, vector<128x128xbf16>
    %cst_14 = arith.constant dense<0.000000e+00> : vector<16x128xf32>
    %18 = tpu.matmul %16, %17, %cst_14 {dimension_numbers = #tpu.dot_dimension_numbers<[1], [0], [0], [1], [0, 0, 1, 1], [], []>} : vector<16x128xbf16>, vector<128x128xbf16>, vector<16x128xf32> -> vector<16x128xf32>
    %c0_15 = arith.constant 0 : index
    %c0_16 = arith.constant 0 : index
    %19 = vector.load %arg7[%c0_15, %c0_16] : memref<1x128xf32, #tpu.memory_space<vmem>>, vector<1x128xf32>
    %20 = vector.broadcast %19 : vector<1x128xf32> to vector<16x128xf32>
    %21 = arith.addf %18, %20 : vector<16x128xf32>
    %cst_17 = arith.constant 0.000000e+00 : f32
    %22 = vector.broadcast %cst_17 : f32 to vector<16x128xf32>
    %23 = arith.maximumf %21, %22 : vector<16x128xf32>
    %24 = arith.truncf %23 : vector<16x128xf32> to vector<16x128xbf16>
    %c0_18 = arith.constant 0 : index
    %c0_19 = arith.constant 0 : index
    %25 = vector.load %arg8[%c0_18, %c0_19] : memref<128x128xbf16, #tpu.memory_space<vmem>>, vector<128x128xbf16>
    %cst_20 = arith.constant dense<0.000000e+00> : vector<16x128xf32>
    %26 = tpu.matmul %24, %25, %cst_20 {dimension_numbers = #tpu.dot_dimension_numbers<[1], [0], [0], [1], [0, 0, 1, 1], [], []>} : vector<16x128xbf16>, vector<128x128xbf16>, vector<16x128xf32> -> vector<16x128xf32>
    %c0_21 = arith.constant 0 : index
    %c0_22 = arith.constant 0 : index
    %27 = vector.load %arg9[%c0_21, %c0_22] : memref<1x128xf32, #tpu.memory_space<vmem>>, vector<1x128xf32>
    %28 = vector.broadcast %27 : vector<1x128xf32> to vector<16x128xf32>
    %29 = arith.addf %26, %28 : vector<16x128xf32>
    %30 = vector.extract_strided_slice %29 {offsets = [0, 8], sizes = [16, 1], strides = [1, 1]} : vector<16x128xf32> to vector<16x1xf32>
    %31 = vector.extract_strided_slice %29 {offsets = [0, 9], sizes = [16, 1], strides = [1, 1]} : vector<16x128xf32> to vector<16x1xf32>
    %32 = vector.broadcast %31 : vector<16x1xf32> to vector<16x128xf32>
    %33 = arith.addf %29, %32 : vector<16x128xf32>
    %cst_23 = arith.constant 1.250000e-01 : f32
    %34 = vector.broadcast %cst_23 : f32 to vector<16x1xf32>
    %35 = arith.mulf %30, %34 : vector<16x1xf32>
    %36 = vector.broadcast %35 : vector<16x1xf32> to vector<16x128xf32>
    %37 = arith.subf %33, %36 : vector<16x128xf32>
    %c0_24 = arith.constant 0 : index
    %c0_25 = arith.constant 0 : index
    %38 = vector.load %arg10[%c0_24, %c0_25] : memref<16x128xf32, #tpu.memory_space<vmem>>, vector<16x128xf32>
    tpu.vector_store %arg10[%c0_24, %c0_25], %37 {strides = array<i32>} : memref<16x128xf32, #tpu.memory_space<vmem>>, vector<16x128xf32>,
    return
  }
  func.func @transform_0(%arg0: i32) -> (i32, i32) {
    %c0_i32 = arith.constant 0 : i32
    %c0_i32_0 = arith.constant 0 : i32
    return %arg0, %c0_i32 : i32, i32
  }
  func.func @transform_1(%arg0: i32) -> (i32, i32) {
    %c0_i32 = arith.constant 0 : i32
    %c0_i32_0 = arith.constant 0 : i32
    %c0_i32_1 = arith.constant 0 : i32
    return %c0_i32, %c0_i32_0 : i32, i32
  }
  func.func @transform_2(%arg0: i32) -> (i32, i32) {
    %c0_i32 = arith.constant 0 : i32
    %c0_i32_0 = arith.constant 0 : i32
    %c0_i32_1 = arith.constant 0 : i32
    return %c0_i32, %c0_i32_0 : i32, i32
  }
  func.func @transform_3(%arg0: i32) -> (i32, i32) {
    %c0_i32 = arith.constant 0 : i32
    %c0_i32_0 = arith.constant 0 : i32
    %c0_i32_1 = arith.constant 0 : i32
    return %c0_i32, %c0_i32_0 : i32, i32
  }
  func.func @transform_4(%arg0: i32) -> (i32, i32) {
    %c0_i32 = arith.constant 0 : i32
    %c0_i32_0 = arith.constant 0 : i32
    %c0_i32_1 = arith.constant 0 : i32
    return %c0_i32, %c0_i32_0 : i32, i32
  }
  func.func @transform_5(%arg0: i32) -> (i32, i32) {
    %c0_i32 = arith.constant 0 : i32
    %c0_i32_0 = arith.constant 0 : i32
    %c0_i32_1 = arith.constant 0 : i32
    return %c0_i32, %c0_i32_0 : i32, i32
  }
  func.func @transform_6(%arg0: i32) -> (i32, i32) {
    %c0_i32 = arith.constant 0 : i32
    %c0_i32_0 = arith.constant 0 : i32
    %c0_i32_1 = arith.constant 0 : i32
    return %c0_i32, %c0_i32_0 : i32, i32
  }
  func.func @transform_7(%arg0: i32) -> (i32, i32) {
    %c0_i32 = arith.constant 0 : i32
    %c0_i32_0 = arith.constant 0 : i32
    %c0_i32_1 = arith.constant 0 : i32
    return %c0_i32, %c0_i32_0 : i32, i32
  }
  func.func @transform_8(%arg0: i32) -> (i32, i32) {
    %c0_i32 = arith.constant 0 : i32
    %c0_i32_0 = arith.constant 0 : i32
    %c0_i32_1 = arith.constant 0 : i32
    return %c0_i32, %c0_i32_0 : i32, i32
  }
  func.func @transform_9(%arg0: i32) -> (i32, i32) {
    %c0_i32 = arith.constant 0 : i32
    %c0_i32_0 = arith.constant 0 : i32
    return %arg0, %c0_i32 : i32, i32
  }
}

</mosaic_0001>

<bundles_post_ra>
// kernel: tpu_custom_call.1
= control target key start
LH: loop header
LB: loop body
LE: loop exit
PB: predicated region body
PF: predicated region fallthrough
CT: control target
= control target key end

     0   :  { %14 = vsyncpa [#allocation3], 0  ;;  %s1080_s0 = inlined_call_operand.hbm [shape: bf16[16,16], index: 0, kind: input, shape index: {}]   ;;  %s1081_s1 = inlined_call_operand.hbm [shape: bf16[16,128], index: 1, kind: input, shape index: {}]   ;;  %s1082_s2 = inlined_call_operand.vmem [shape: f32[1,128], index: 2, kind: input, shape index: {}]   ;;  %s1083_s3 = inlined_call_operand.hbm [shape: bf16[128,128], index: 3, kind: input, shape index: {}]   ;;  %s1084_s4 = inlined_call_operand.vmem [shape: f32[1,128], index: 4, kind: input, shape index: {}]   ;;  %s1085_s5 = inlined_call_operand.hbm [shape: bf16[128,128], index: 5, kind: input, shape index: {}]   ;;  %s1086_s6 = inlined_call_operand.vmem [shape: f32[1,128], index: 6, kind: input, shape index: {}]   ;;  %s1087_s7 = inlined_call_operand.hbm [shape: bf16[128,128], index: 7, kind: input, shape index: {}]   ;;  %s1088_s8 = inlined_call_operand.vmem [shape: f32[1,128], index: 8, kind: input, shape index: {}]   ;;  %s1089_s9 = inlined_call_operand.hbm [shape: f32[16,128], index: 9, kind: output, shape index: {}]  }
   0x1   :  { %15 = vsyncpa [#allocation6], 0 }
   0x2   :  { %16 = vsyncpa [#allocation9], 0 }
   0x3   :  { %17 = vsyncpa [#allocation4], 0  ;;  %s870_s30 = smov [#allocation5]   ;;  %s871_s11 = smov [#allocation8]  }
   0x4   :  { %s35_s10 = sshll.u32 %s870_s30, 4  ;;  %s63_s12 = sshll.u32 %s871_s11, 4  ;;  %s36_s10 = int_to_ptr.vmem [resolvable:$true] %s35_s10  ;;  %s934_s12 = int_to_ptr.vmem [resolvable:$true] %s63_s12 }
   0x5   :  { %s730_s15 = scalar_lea.hbm %s1081_s1, 128 }
   0x6   :  { %p731_p0 = scmp.ne.s32.totalorder %s1081_s1, %s730_s15  ;;  %p734_p1 = scmp.lt.u32.totalorder %s730_s15, %s1081_s1 }
   0x8   :  { %p736_p2 = pnand %p734_p1, %p731_p0 }
   0xa   :  { %739 = shalt.err (!%p736_p2)
}
   0xb   :  { %s740_s20 = scalar_lea.vmem %s36_s10, 128  ;;  %p745_p4 = scmp.lt.s32.totalorder %s36_s10, %s36_s10 }
   0xc   :  { %p741_p3 = scmp.ne.s32.totalorder %s36_s10, %s740_s20  ;;  %p746_p5 = scmp.lt.s32.totalorder %s740_s20, %s740_s20 }
   0xe   :  { %p747_p6 = por %p746_p5, %p745_p4 }
  0x10   :  { %p748_p7 = pnand %p747_p6, %p741_p3 }
  0x12   :  { %751 = shalt.err (!%p748_p7)
}
  0x13   :  { %s872_s21 = smov 64   ;;  %s873_s22 = smov 4  }
  0x14   :  { %41 = dma.hbm_to_vmem [thread:$0]  %s1081_s1, 128, %s36_s10, [#allocation6], %s872_s21, %s872_s21, %s873_s22  }
  0x15   :  { %s752_s27 = scalar_lea.hbm %s1085_s5, 1024 }
  0x16   :  { %p753_p8 = scmp.ne.s32.totalorder %s1085_s5, %s752_s27  ;;  %p756_p9 = scmp.lt.u32.totalorder %s752_s27, %s1085_s5 }
  0x18   :  { %p758_p10 = pnand %p756_p9, %p753_p8 }
  0x1a   :  { %761 = shalt.err (!%p758_p10)
}
  0x1b   :  { %s762_s13 = scalar_lea.vmem %s934_s12, 1024  ;;  %p767_p12 = scmp.lt.s32.totalorder %s934_s12, %s934_s12 }
  0x1c   :  { %p763_p11 = scmp.ne.s32.totalorder %s934_s12, %s762_s13  ;;  %p768_p13 = scmp.lt.s32.totalorder %s762_s13, %s762_s13 }
  0x1e   :  { %p769_p0 = por %p768_p13, %p767_p12 }
  0x20   :  { %p770_p1 = pnand %p769_p0, %p763_p11 }
  0x22   :  { %773 = shalt.err (!%p770_p1)
}
  0x23   :  { %69 = dma.hbm_to_vmem [thread:$0]  %s1085_s5, 1024, %s934_s12, [#allocation9], %s872_s21, %s872_s21, %s873_s22  }
  0x24   :  { %s874_s14 = smov [#allocation2]   ;;  %s875_s16 = smov [#allocation7]  }
  0x25   :  { %s23_s15 = sshll.u32 %s874_s14, 4  ;;  %s49_s17 = sshll.u32 %s875_s16, 4  ;;  %s24_s15 = int_to_ptr.vmem [resolvable:$true] %s23_s15  ;;  %s971_s17 = int_to_ptr.vmem [resolvable:$true] %s49_s17 }
  0x26   :  { %s774_s20 = scalar_lea.hbm %s1080_s0, 128 }
  0x27   :  { %p775_p2 = scmp.ne.s32.totalorder %s1080_s0, %s774_s20  ;;  %p778_p3 = scmp.lt.u32.totalorder %s774_s20, %s1080_s0 }
  0x29   :  { %p780_p4 = pnand %p778_p3, %p775_p2 }
  0x2b   :  { %783 = shalt.err (!%p780_p4)
}
  0x2c   :  { %s784_s5 = scalar_lea.vmem %s24_s15, 128  ;;  %p789_p6 = scmp.lt.s32.totalorder %s24_s15, %s24_s15 }
  0x2d   :  { %p785_p5 = scmp.ne.s32.totalorder %s24_s15, %s784_s5  ;;  %p790_p7 = scmp.lt.s32.totalorder %s784_s5, %s784_s5 }
  0x2f   :  { %p791_p8 = por %p790_p7, %p789_p6 }
  0x31   :  { %p792_p9 = pnand %p791_p8, %p785_p5 }
  0x33   :  { %795 = shalt.err (!%p792_p9)
}
  0x34   :  { %29 = dma.hbm_to_vmem [thread:$0]  %s1080_s0, 128, %s24_s15, [#allocation3], %s872_s21, %s872_s21, %s873_s22  }
  0x35   :  { %s796_s30 = scalar_lea.hbm %s1083_s3, 1024 }
  0x36   :  { %p797_p10 = scmp.ne.s32.totalorder %s1083_s3, %s796_s30  ;;  %p800_p11 = scmp.lt.u32.totalorder %s796_s30, %s1083_s3 }
  0x38   :  { %p802_p12 = pnand %p800_p11, %p797_p10 }
  0x3a   :  { %805 = shalt.err (!%p802_p12)
}
  0x3b   :  { %s806_s14 = scalar_lea.vmem %s971_s17, 1024  ;;  %p811_p0 = scmp.lt.s32.totalorder %s971_s17, %s971_s17 }
  0x3c   :  { %p807_p13 = scmp.ne.s32.totalorder %s971_s17, %s806_s14  ;;  %p812_p1 = scmp.lt.s32.totalorder %s806_s14, %s806_s14 }
  0x3e   :  { %p813_p2 = por %p812_p1, %p811_p0 }
  0x40   :  { %p814_p3 = pnand %p813_p2, %p807_p13 }
  0x42   :  { %817 = shalt.err (!%p814_p3)
}
  0x43   :  { %55 = dma.hbm_to_vmem [thread:$0]  %s1083_s3, 1024, %s971_s17, [#allocation6], %s872_s21, %s872_s21, %s873_s22  }
  0x44   :  { %s876_s16 = smov [#allocation10]   ;;  %s818_s23 = scalar_lea.hbm %s1087_s7, 1024 }
  0x45   :  { %s77_s18 = sshll.u32 %s876_s16, 4  ;;  %p819_p4 = scmp.ne.s32.totalorder %s1087_s7, %s818_s23  ;;  %s78_s18 = int_to_ptr.vmem [resolvable:$true] %s77_s18 }
  0x46   :  { %p822_p5 = scmp.lt.u32.totalorder %s818_s23, %s1087_s7 }
  0x48   :  { %p824_p6 = pnand %p822_p5, %p819_p4 }
  0x4a   :  { %827 = shalt.err (!%p824_p6)
}
  0x4b   :  { %s828_s12 = scalar_lea.vmem %s78_s18, 1024  ;;  %p833_p8 = scmp.lt.s32.totalorder %s78_s18, %s78_s18 }
  0x4c   :  { %p829_p7 = scmp.ne.s32.totalorder %s78_s18, %s828_s12  ;;  %p834_p9 = scmp.lt.s32.totalorder %s828_s12, %s828_s12 }
  0x4e   :  { %p835_p10 = por %p834_p9, %p833_p8 }
  0x50   :  { %p836_p11 = pnand %p835_p10, %p829_p7 }
  0x52   :  { %839 = shalt.err (!%p836_p11)
}
  0x53   :  { %83 = dma.hbm_to_vmem [thread:$0]  %s1087_s7, 1024, %s78_s18, [#allocation9], %s872_s21, %s872_s21, %s873_s22  }
  0x54   :  { %862 = dma.done.wait [#allocation3], 128  }
  0x55   :  { %863 = vsyncadd [#allocation3], 4294967168 }
  0x56   :  { %864 = dma.done.wait [#allocation6], 1152  }
  0x57   :  { %865 = vsyncadd [#allocation6], 4294966144 }
  0x58   :  { %866 = dma.done.wait [#allocation9], 2048  }
  0x59   :  { %867 = vsyncadd [#allocation9], 4294965248  ;;  %v877_v0 = vmov 0.0   ;;  %vm878_vm0 = vmmov 0   ;;  %v704_v1 = vld [vmem:[#allocation5] sm:$0xff]   ;;  %v705_v2 = vld [vmem:[#allocation2] sm:$0xff]  }
  0x5a   :  { %621 = vmatprep.subr.bf16.mxu0 %v877_v0  ;;  %623 = vmatprep.mubr.msk.bf16.mxu0 %vm878_vm0, %v877_v0  ;;  %vm124_vm1 = vcmask 130048   ;;  %v706_v3 = vld [vmem:[#allocation7] sm:$0xff]   ;;  %v707_v4 = vld [vmem:[#allocation7 + $0x8] sm:$0xff]   ;;  %v708_v5 = vld [vmem:[#allocation7 + $0x10] sm:$0xff]   ;;  %v879_v57 = vmov 9   ;;  %v880_v58 = vmov 8  }
  0x5b   :  { %627 = vmatprep.subr.bf16.mxu1 %v877_v0  ;;  %643 = vmatprep.mubr.msk.bf16.mxu1 %vm878_vm0, %v877_v0  ;;  %v709_v6 = vld [vmem:[#allocation7 + $0x18] sm:$0xff]   ;;  %v710_v7 = vld [vmem:[#allocation7 + $0x20] sm:$0xff]   ;;  %v711_v8 = vld [vmem:[#allocation7 + $0x28] sm:$0xff]  }
  0x5c   :  { %622 = vmatpush3.bf16.msra.mxu0 %v704_v1  ;;  %628 = vmatpush3.bf16.msra.mxu1 %v706_v3  ;;  %v712_v9 = vld [vmem:[#allocation7 + $0x30] sm:$0xff]   ;;  %v713_v10 = vld [vmem:[#allocation7 + $0x38] sm:$0xff]   ;;  %v714_v11 = vld [vmem:[#allocation8] sm:$0xff]  }
  0x5d   :  { %647 = vmatprep.subr.bf16.mxu0 %v877_v0  ;;  %629 = vmatprep.subr.bf16.mxu1 %v877_v0  ;;  %v715_v12 = vld [vmem:[#allocation8 + $0x8] sm:$0xff]   ;;  %v716_v13 = vld [vmem:[#allocation8 + $0x10] sm:$0xff]   ;;  %v717_v14 = vld [vmem:[#allocation8 + $0x18] sm:$0xff]  }
  0x5e   :  { %v718_v15 = vld [vmem:[#allocation8 + $0x20] sm:$0xff]   ;;  %v719_v16 = vld [vmem:[#allocation8 + $0x28] sm:$0xff]   ;;  %v561_v17 = vld [vmem:[%s1082_s2] ss:$0 sm:$0xff]  ;;  %701 = vset.pattern.permute.xlu0 %v879_v57  ;;  %702 = vset.pattern.permute.xlu1 %v880_v58 }
  0x5f   :  { %624 = vmatmul.mubr.msk.bf16.vlgmr.msra.gmra.mrb[0].mxu0 %vm124_vm1, %v705_v2  ;;  %v720_v27 = vld [vmem:[#allocation8 + $0x30] sm:$0xff]   ;;  %v721_v28 = vld [vmem:[#allocation8 + $0x38] sm:$0xff]   ;;  %v722_v29 = vld [vmem:[#allocation10] sm:$0xff]  }
  0x60   :  { %663 = vmatprep.mubr.msk.bf16.mxu0 %vm878_vm0, %v877_v0  ;;  %630 = vmatpush3.bf16.msra.mxu1 %v707_v4  ;;  %v723_v30 = vld [vmem:[#allocation10 + $0x8] sm:$0xff]   ;;  %v724_v31 = vld [vmem:[#allocation10 + $0x10] sm:$0xff]   ;;  %v725_v32 = vld [vmem:[#allocation10 + $0x18] sm:$0xff]  }
  0x61   :  { %631 = vmatprep.subr.bf16.mxu1 %v877_v0  ;;  %648 = vmatpush3.bf16.msra.mxu0 %v714_v11  ;;  %v726_v33 = vld [vmem:[#allocation10 + $0x20] sm:$0xff]   ;;  %v727_v34 = vld [vmem:[#allocation10 + $0x28] sm:$0xff]   ;;  %v565_v35 = vld [vmem:[%s1084_s4] ss:$0 sm:$0xff] }
  0x62   :  { %649 = vmatprep.subr.bf16.mxu0 %v877_v0  ;;  %v728_v45 = vld [vmem:[#allocation10 + $0x30] sm:$0xff]   ;;  %v729_v46 = vld [vmem:[#allocation10 + $0x38] sm:$0xff]  }
  0x63   :  { %v574_v47 = vld [vmem:[%s1086_s6] ss:$0 sm:$0xff]  ;;  %s881_s6 = smov [#allocation11]  }
  0x64   :  { %632 = vmatpush3.bf16.msra.mxu1 %v708_v5  ;;  %v583_v59 = vld [vmem:[%s1088_s8] ss:$0 sm:$0xff]  ;;  %s547_s30 = sshll.u32 %s881_s6, 4  ;;  %s548_s30 = int_to_ptr.vmem [resolvable:$true] %s547_s30 }
  0x65   :  { %633 = vmatprep.subr.bf16.mxu1 %v877_v0  ;;  %650 = vmatpush3.bf16.msra.mxu0 %v715_v12  ;;  %s840_s8 = scalar_lea.vmem %s548_s30, 256  ;;  %p845_p13 = scmp.lt.s32.totalorder %s548_s30, %s548_s30 }
  0x66   :  { %651 = vmatprep.subr.bf16.mxu0 %v877_v0  ;;  %p841_p12 = scmp.ne.s32.totalorder %s548_s30, %s840_s8  ;;  %p846_p0 = scmp.lt.s32.totalorder %s840_s8, %s840_s8 }
  0x68   :  { %634 = vmatpush3.bf16.msra.mxu1 %v709_v6  ;;  %p847_p1 = por %p846_p0, %p845_p13 }
  0x69   :  { %635 = vmatprep.subr.bf16.mxu1 %v877_v0  ;;  %652 = vmatpush3.bf16.msra.mxu0 %v716_v13 }
  0x6a   :  { %653 = vmatprep.subr.bf16.mxu0 %v877_v0  ;;  %p848_p2 = pnand %p847_p1, %p841_p12 }
  0x6c   :  { %636 = vmatpush3.bf16.msra.mxu1 %v710_v7 }
  0x6d   :  { %637 = vmatprep.subr.bf16.mxu1 %v877_v0  ;;  %654 = vmatpush3.bf16.msra.mxu0 %v717_v14 }
  0x6e   :  { %655 = vmatprep.subr.bf16.mxu0 %v877_v0 }
  0x70   :  { %638 = vmatpush3.bf16.msra.mxu1 %v711_v8 }
  0x71   :  { %639 = vmatprep.subr.bf16.mxu1 %v877_v0  ;;  %656 = vmatpush3.bf16.msra.mxu0 %v718_v15 }
  0x72   :  { %657 = vmatprep.subr.bf16.mxu0 %v877_v0 }
  0x74   :  { %640 = vmatpush3.bf16.msra.mxu1 %v712_v9 }
  0x75   :  { %641 = vmatprep.subr.bf16.mxu1 %v877_v0  ;;  %658 = vmatpush3.bf16.msra.mxu0 %v719_v16 }
  0x76   :  { %659 = vmatprep.subr.bf16.mxu0 %v877_v0 }
  0x78   :  { %642 = vmatpush3.bf16.msra.mxu1 %v713_v10 }
  0x79   :  { %667 = vmatprep.subr.bf16.mxu1 %v877_v0  ;;  %660 = vmatpush3.bf16.msra.mxu0 %v720_v27 }
  0x7a   :  { %661 = vmatprep.subr.bf16.mxu0 %v877_v0 }
  0x7d   :  { %662 = vmatpush3.bf16.msra.mxu0 %v721_v28 }
 0x132   :  { %v162_v18 = vpop.f32.mrb[0].mxu0 }
 0x133   :  { %v163_v19 = vadd.f32 %v561_v17, %v162_v18  ;;  %v625_v20 = vpop.f32.mrb[1].mxu0 }
 0x134   :  { %v165_v21 = vpop.f32.mrb[2].mxu0 }
 0x135   :  { %v166_v22 = vadd.f32 %v561_v17, %v165_v21  ;;  %v626_v23 = vpop.f32.mrb[3].mxu0  ;;  %v169_v24 = vmax.f32 %v163_v19, 0.0 }
 0x137   :  { %v170_v25 = vmax.f32 %v166_v22, 0.0 }
 0x139   :  { %v171_v26 = vpack.c.bf16 %v170_v25, %v169_v24 }
 0x13b   :  { %644 = vmatmul.mubr.bf16.vlgmr.msra.gmra.mrb[0].mxu1 %v171_v26 }
 0x13c   :  { %683 = vmatprep.mubr.msk.bf16.mxu1 %vm878_vm0, %v877_v0  ;;  %668 = vmatpush3.bf16.msra.mxu1 %v722_v29 }
 0x13d   :  { %669 = vmatprep.subr.bf16.mxu1 %v877_v0 }
 0x140   :  { %670 = vmatpush3.bf16.msra.mxu1 %v723_v30 }
 0x141   :  { %671 = vmatprep.subr.bf16.mxu1 %v877_v0 }
 0x144   :  { %672 = vmatpush3.bf16.msra.mxu1 %v724_v31 }
 0x145   :  { %673 = vmatprep.subr.bf16.mxu1 %v877_v0 }
 0x148   :  { %674 = vmatpush3.bf16.msra.mxu1 %v725_v32 }
 0x149   :  { %675 = vmatprep.subr.bf16.mxu1 %v877_v0 }
 0x14c   :  { %676 = vmatpush3.bf16.msra.mxu1 %v726_v33 }
 0x14d   :  { %677 = vmatprep.subr.bf16.mxu1 %v877_v0 }
 0x150   :  { %678 = vmatpush3.bf16.msra.mxu1 %v727_v34 }
 0x151   :  { %679 = vmatprep.subr.bf16.mxu1 %v877_v0 }
 0x154   :  { %680 = vmatpush3.bf16.msra.mxu1 %v728_v45 }
 0x155   :  { %681 = vmatprep.subr.bf16.mxu1 %v877_v0 }
 0x158   :  { %682 = vmatpush3.bf16.msra.mxu1 %v729_v46 }
 0x20e   :  { %v277_v36 = vpop.f32.mrb[0].mxu1 }
 0x20f   :  { %v278_v37 = vadd.f32 %v565_v35, %v277_v36  ;;  %v645_v38 = vpop.f32.mrb[1].mxu1 }
 0x210   :  { %v280_v39 = vpop.f32.mrb[2].mxu1 }
 0x211   :  { %v281_v40 = vadd.f32 %v565_v35, %v280_v39  ;;  %v646_v41 = vpop.f32.mrb[3].mxu1  ;;  %v284_v42 = vmax.f32 %v278_v37, 0.0 }
 0x213   :  { %v285_v43 = vmax.f32 %v281_v40, 0.0 }
 0x215   :  { %v286_v44 = vpack.c.bf16 %v285_v43, %v284_v42 }
 0x217   :  { %664 = vmatmul.mubr.bf16.vlgmr.msra.gmra.mrb[4].mxu0 %v286_v44 }
 0x2ea   :  { %v392_v48 = vpop.f32.mrb[4].mxu0 }
 0x2eb   :  { %v393_v49 = vadd.f32 %v574_v47, %v392_v48  ;;  %v665_v50 = vpop.f32.mrb[5].mxu0 }
 0x2ec   :  { %v395_v51 = vpop.f32.mrb[6].mxu0 }
 0x2ed   :  { %v396_v52 = vadd.f32 %v574_v47, %v395_v51  ;;  %v666_v53 = vpop.f32.mrb[7].mxu0  ;;  %v399_v54 = vmax.f32 %v393_v49, 0.0 }
 0x2ef   :  { %v400_v55 = vmax.f32 %v396_v52, 0.0 }
 0x2f1   :  { %v401_v56 = vpack.c.bf16 %v400_v55, %v399_v54 }
 0x2f3   :  { %684 = vmatmul.mubr.bf16.vlgmr.msra.gmra.mrb[4].mxu1 %v401_v56 }
 0x3c6   :  { %v507_v60 = vpop.f32.mrb[4].mxu1 }
 0x3c7   :  { %v508_v61 = vadd.f32 %v583_v59, %v507_v60  ;;  %v685_v62 = vpop.f32.mrb[5].mxu1 }
 0x3c8   :  { %v510_v63 = vpop.f32.mrb[6].mxu1 }
 0x3c9   :  { %v511_v0 = vadd.f32 %v583_v59, %v510_v63  ;;  %516 = vperm.xlu0 %701, %v508_v61   ;;  %v686_v1 = vpop.f32.mrb[7].mxu1  ;;  %v526_v2 = vmul.f32 0.125, %v508_v61 }
 0x3cb   :  { %530 = vperm.xlu1 %702, %v526_v2   ;;  %v527_v3 = vmul.f32 0.125, %v511_v0 }
 0x3cd   :  { %521 = vperm.xlu0 %701, %v511_v0  }
 0x3cf   :  { %535 = vperm.xlu1 %702, %v527_v3  }
 0x3d1   :  { %703 = vset.pattern.permute.xlu0 %v880_v58 }
 0x448   :  { %v517_v4 = vpop.permute.xlu0 %516 }
 0x449   :  { %v524_v5 = vadd.f32 %v517_v4, %v508_v61 }
 0x44a   :  { %v531_v6 = vpop.permute.xlu1 %530 }
 0x44b   :  { %v538_v7 = vsub.f32 %v524_v5, %v531_v6 }
 0x44c   :  { %v522_v8 = vpop.permute.xlu0 %521 }
 0x44d   :  { %540 = vst [vmem:[#allocation11] sm:$0xff] %v538_v7  ;;  %v525_v9 = vadd.f32 %v522_v8, %v511_v0 }
 0x44e   :  { %v536_v10 = vpop.permute.xlu1 %535 }
 0x44f   :  { %v539_v11 = vsub.f32 %v525_v9, %v536_v10 }
 0x451   :  { %541 = vst [vmem:[#allocation11 + $0x8] sm:$0xff] %v539_v11 }
 0x452   :  { %851 = shalt.err (!%p848_p2)
}
 0x453   :  { %s852_s1 = scalar_lea.hbm %s1089_s9, 256 }
 0x454   :  { %p853_p3 = scmp.ne.s32.totalorder %s1089_s9, %s852_s1  ;;  %p856_p4 = scmp.lt.u32.totalorder %s852_s1, %s1089_s9 }
 0x456   :  { %p858_p5 = pnand %p856_p4, %p853_p3 }
 0x458   :  { %861 = shalt.err (!%p858_p5)
}
 0x459   :  { %s882_s16 = smov 128   ;;  %s883_s18 = smov 8  }
 0x45a   :  { %553 = dma.vmem_to_hbm [thread:$0]  %s548_s30, 256, %s1089_s9, [#allocation4], %s882_s16, %s882_s16, %s883_s18  }
 0x45b   :  { %868 = dma.done.wait [#allocation4], 256  }
 0x45c   :  { %869 = vsyncadd [#allocation4], 4294967040 }
 0x45d   :  { %557 = vsyncpa [#allocation3], 1 }
 0x45e   :  { %558 = vsyncpa [#allocation6], 1 }
 0x45f   :  { %559 = vsyncpa [#allocation9], 1 }
 0x460   :  { %560 = vsyncpa [#allocation4], 1 }

// kernel: tpu_custom_call.1
= control target key start
LH: loop header
LB: loop body
LE: loop exit
PB: predicated region body
PF: predicated region fallthrough
CT: control target
= control target key end

     0   :  { %14 = vsyncpa [#allocation3], 0  ;;  %s1080_s0 = inlined_call_operand.hbm [shape: bf16[16,16], index: 0, kind: input, shape index: {}]   ;;  %s1081_s1 = inlined_call_operand.hbm [shape: bf16[16,128], index: 1, kind: input, shape index: {}]   ;;  %s1082_s2 = inlined_call_operand.vmem [shape: f32[1,128], index: 2, kind: input, shape index: {}]   ;;  %s1083_s3 = inlined_call_operand.hbm [shape: bf16[128,128], index: 3, kind: input, shape index: {}]   ;;  %s1084_s4 = inlined_call_operand.vmem [shape: f32[1,128], index: 4, kind: input, shape index: {}]   ;;  %s1085_s5 = inlined_call_operand.hbm [shape: bf16[128,128], index: 5, kind: input, shape index: {}]   ;;  %s1086_s6 = inlined_call_operand.vmem [shape: f32[1,128], index: 6, kind: input, shape index: {}]   ;;  %s1087_s7 = inlined_call_operand.hbm [shape: bf16[128,128], index: 7, kind: input, shape index: {}]   ;;  %s1088_s8 = inlined_call_operand.vmem [shape: f32[1,128], index: 8, kind: input, shape index: {}]   ;;  %s1089_s9 = inlined_call_operand.hbm [shape: f32[16,128], index: 9, kind: output, shape index: {}]  }
   0x1   :  { %15 = vsyncpa [#allocation6], 0 }
   0x2   :  { %16 = vsyncpa [#allocation9], 0 }
   0x3   :  { %17 = vsyncpa [#allocation4], 0  ;;  %s870_s30 = smov [#allocation5]   ;;  %s871_s11 = smov [#allocation8]  }
   0x4   :  { %s35_s10 = sshll.u32 %s870_s30, 4  ;;  %s63_s12 = sshll.u32 %s871_s11, 4  ;;  %s36_s10 = int_to_ptr.vmem [resolvable:$true] %s35_s10  ;;  %s934_s12 = int_to_ptr.vmem [resolvable:$true] %s63_s12 }
   0x5   :  { %s730_s15 = scalar_lea.hbm %s1081_s1, 128 }
   0x6   :  { %p731_p0 = scmp.ne.s32.totalorder %s1081_s1, %s730_s15  ;;  %p734_p1 = scmp.lt.u32.totalorder %s730_s15, %s1081_s1 }
   0x8   :  { %p736_p2 = pnand %p734_p1, %p731_p0 }
   0xa   :  { %739 = shalt.err (!%p736_p2)
}
   0xb   :  { %s740_s20 = scalar_lea.vmem %s36_s10, 128  ;;  %p745_p4 = scmp.lt.s32.totalorder %s36_s10, %s36_s10 }
   0xc   :  { %p741_p3 = scmp.ne.s32.totalorder %s36_s10, %s740_s20  ;;  %p746_p5 = scmp.lt.s32.totalorder %s740_s20, %s740_s20 }
   0xe   :  { %p747_p6 = por %p746_p5, %p745_p4 }
  0x10   :  { %p748_p7 = pnand %p747_p6, %p741_p3 }
  0x12   :  { %751 = shalt.err (!%p748_p7)
}
  0x13   :  { %s872_s21 = smov 64   ;;  %s873_s22 = smov 4  }
  0x14   :  { %41 = dma.hbm_to_vmem [thread:$0]  %s1081_s1, 128, %s36_s10, [#allocation6], %s872_s21, %s872_s21, %s873_s22  }
  0x15   :  { %s752_s27 = scalar_lea.hbm %s1085_s5, 1024 }
  0x16   :  { %p753_p8 = scmp.ne.s32.totalorder %s1085_s5, %s752_s27  ;;  %p756_p9 = scmp.lt.u32.totalorder %s752_s27, %s1085_s5 }
  0x18   :  { %p758_p10 = pnand %p756_p9, %p753_p8 }
  0x1a   :  { %761 = shalt.err (!%p758_p10)
}
  0x1b   :  { %s762_s13 = scalar_lea.vmem %s934_s12, 1024  ;;  %p767_p12 = scmp.lt.s32.totalorder %s934_s12, %s934_s12 }
  0x1c   :  { %p763_p11 = scmp.ne.s32.totalorder %s934_s12, %s762_s13  ;;  %p768_p13 = scmp.lt.s32.totalorder %s762_s13, %s762_s13 }
  0x1e   :  { %p769_p0 = por %p768_p13, %p767_p12 }
  0x20   :  { %p770_p1 = pnand %p769_p0, %p763_p11 }
  0x22   :  { %773 = shalt.err (!%p770_p1)
}
  0x23   :  { %69 = dma.hbm_to_vmem [thread:$0]  %s1085_s5, 1024, %s934_s12, [#allocation9], %s872_s21, %s872_s21, %s873_s22  }
  0x24   :  { %s874_s14 = smov [#allocation2]   ;;  %s875_s16 = smov [#allocation7]  }
  0x25   :  { %s23_s15 = sshll.u32 %s874_s14, 4  ;;  %s49_s17 = sshll.u32 %s875_s16, 4  ;;  %s24_s15 = int_to_ptr.vmem [resolvable:$true] %s23_s15  ;;  %s971_s17 = int_to_ptr.vmem [resolvable:$true] %s49_s17 }
  0x26   :  { %s774_s20 = scalar_lea.hbm %s1080_s0, 128 }
  0x27   :  { %p775_p2 = scmp.ne.s32.totalorder %s1080_s0, %s774_s20  ;;  %p778_p3 = scmp.lt.u32.totalorder %s774_s20, %s1080_s0 }
  0x29   :  { %p780_p4 = pnand %p778_p3, %p775_p2 }
  0x2b   :  { %783 = shalt.err (!%p780_p4)
}
  0x2c   :  { %s784_s5 = scalar_lea.vmem %s24_s15, 128  ;;  %p789_p6 = scmp.lt.s32.totalorder %s24_s15, %s24_s15 }
  0x2d   :  { %p785_p5 = scmp.ne.s32.totalorder %s24_s15, %s784_s5  ;;  %p790_p7 = scmp.lt.s32.totalorder %s784_s5, %s784_s5 }
  0x2f   :  { %p791_p8 = por %p790_p7, %p789_p6 }
  0x31   :  { %p792_p9 = pnand %p791_p8, %p785_p5 }
  0x33   :  { %795 = shalt.err (!%p792_p9)
}
  0x34   :  { %29 = dma.hbm_to_vmem [thread:$0]  %s1080_s0, 128, %s24_s15, [#allocation3], %s872_s21, %s872_s21, %s873_s22  }
  0x35   :  { %s796_s30 = scalar_lea.hbm %s1083_s3, 1024 }
  0x36   :  { %p797_p10 = scmp.ne.s32.totalorder %s1083_s3, %s796_s30  ;;  %p800_p11 = scmp.lt.u32.totalorder %s796_s30, %s1083_s3 }
  0x38   :  { %p802_p12 = pnand %p800_p11, %p797_p10 }
  0x3a   :  { %805 = shalt.err (!%p802_p12)
}
  0x3b   :  { %s806_s14 = scalar_lea.vmem %s971_s17, 1024  ;;  %p811_p0 = scmp.lt.s32.totalorder %s971_s17, %s971_s17 }
  0x3c   :  { %p807_p13 = scmp.ne.s32.totalorder %s971_s17, %s806_s14  ;;  %p812_p1 = scmp.lt.s32.totalorder %s806_s14, %s806_s14 }
  0x3e   :  { %p813_p2 = por %p812_p1, %p811_p0 }
  0x40   :  { %p814_p3 = pnand %p813_p2, %p807_p13 }
  0x42   :  { %817 = shalt.err (!%p814_p3)
}
  0x43   :  { %55 = dma.hbm_to_vmem [thread:$0]  %s1083_s3, 1024, %s971_s17, [#allocation6], %s872_s21, %s872_s21, %s873_s22  }
  0x44   :  { %s876_s16 = smov [#allocation10]   ;;  %s818_s23 = scalar_lea.hbm %s1087_s7, 1024 }
  0x45   :  { %s77_s18 = sshll.u32 %s876_s16, 4  ;;  %p819_p4 = scmp.ne.s32.totalorder %s1087_s7, %s818_s23  ;;  %s78_s18 = int_to_ptr.vmem [resolvable:$true] %s77_s18 }
  0x46   :  { %p822_p5 = scmp.lt.u32.totalorder %s818_s23, %s1087_s7 }
  0x48   :  { %p824_p6 = pnand %p822_p5, %p819_p4 }
  0x4a   :  { %827 = shalt.err (!%p824_p6)
}
  0x4b   :  { %s828_s12 = scalar_lea.vmem %s78_s18, 1024  ;;  %p833_p8 = scmp.lt.s32.totalorder %s78_s18, %s78_s18 }
  0x4c   :  { %p829_p7 = scmp.ne.s32.totalorder %s78_s18, %s828_s12  ;;  %p834_p9 = scmp.lt.s32.totalorder %s828_s12, %s828_s12 }
  0x4e   :  { %p835_p10 = por %p834_p9, %p833_p8 }
  0x50   :  { %p836_p11 = pnand %p835_p10, %p829_p7 }
  0x52   :  { %839 = shalt.err (!%p836_p11)
}
  0x53   :  { %83 = dma.hbm_to_vmem [thread:$0]  %s1087_s7, 1024, %s78_s18, [#allocation9], %s872_s21, %s872_s21, %s873_s22  }
  0x54   :  { %862 = dma.done.wait [#allocation3], 128  }
  0x55   :  { %863 = vsyncadd [#allocation3], 4294967168 }
  0x56   :  { %864 = dma.done.wait [#allocation6], 1152  }
  0x57   :  { %865 = vsyncadd [#allocation6], 4294966144 }
  0x58   :  { %866 = dma.done.wait [#allocation9], 2048  }
  0x59   :  { %867 = vsyncadd [#allocation9], 4294965248  ;;  %v877_v0 = vmov 0.0   ;;  %vm878_vm0 = vmmov 0   ;;  %v704_v1 = vld [vmem:[#allocation5] sm:$0xff]   ;;  %v705_v2 = vld [vmem:[#allocation2] sm:$0xff]  }
  0x5a   :  { %621 = vmatprep.subr.bf16.mxu0 %v877_v0  ;;  %623 = vmatprep.mubr.msk.bf16.mxu0 %vm878_vm0, %v877_v0  ;;  %vm124_vm1 = vcmask 130048   ;;  %v706_v3 = vld [vmem:[#allocation7] sm:$0xff]   ;;  %v707_v4 = vld [vmem:[#allocation7 + $0x8] sm:$0xff]   ;;  %v708_v5 = vld [vmem:[#allocation7 + $0x10] sm:$0xff]   ;;  %v879_v57 = vmov 9   ;;  %v880_v58 = vmov 8  }
  0x5b   :  { %627 = vmatprep.subr.bf16.mxu1 %v877_v0  ;;  %643 = vmatprep.mubr.msk.bf16.mxu1 %vm878_vm0, %v877_v0  ;;  %v709_v6 = vld [vmem:[#allocation7 + $0x18] sm:$0xff]   ;;  %v710_v7 = vld [vmem:[#allocation7 + $0x20] sm:$0xff]   ;;  %v711_v8 = vld [vmem:[#allocation7 + $0x28] sm:$0xff]  }
  0x5c   :  { %622 = vmatpush3.bf16.msra.mxu0 %v704_v1  ;;  %628 = vmatpush3.bf16.msra.mxu1 %v706_v3  ;;  %v712_v9 = vld [vmem:[#allocation7 + $0x30] sm:$0xff]   ;;  %v713_v10 = vld [vmem:[#allocation7 + $0x38] sm:$0xff]   ;;  %v714_v11 = vld [vmem:[#allocation8] sm:$0xff]  }
  0x5d   :  { %647 = vmatprep.subr.bf16.mxu0 %v877_v0  ;;  %629 = vmatprep.subr.bf16.mxu1 %v877_v0  ;;  %v715_v12 = vld [vmem:[#allocation8 + $0x8] sm:$0xff]   ;;  %v716_v13 = vld [vmem:[#allocation8 + $0x10] sm:$0xff]   ;;  %v717_v14 = vld [vmem:[#allocation8 + $0x18] sm:$0xff]  }
  0x5e   :  { %v718_v15 = vld [vmem:[#allocation8 + $0x20] sm:$0xff]   ;;  %v719_v16 = vld [vmem:[#allocation8 + $0x28] sm:$0xff]   ;;  %v561_v17 = vld [vmem:[%s1082_s2] ss:$0 sm:$0xff]  ;;  %701 = vset.pattern.permute.xlu0 %v879_v57  ;;  %702 = vset.pattern.permute.xlu1 %v880_v58 }
  0x5f   :  { %624 = vmatmul.mubr.msk.bf16.vlgmr.msra.gmra.mrb[0].mxu0 %vm124_vm1, %v705_v2  ;;  %v720_v27 = vld [vmem:[#allocation8 + $0x30] sm:$0xff]   ;;  %v721_v28 = vld [vmem:[#allocation8 + $0x38] sm:$0xff]   ;;  %v722_v29 = vld [vmem:[#allocation10] sm:$0xff]  }
  0x60   :  { %663 = vmatprep.mubr.msk.bf16.mxu0 %vm878_vm0, %v877_v0  ;;  %630 = vmatpush3.bf16.msra.mxu1 %v707_v4  ;;  %v723_v30 = vld [vmem:[#allocation10 + $0x8] sm:$0xff]   ;;  %v724_v31 = vld [vmem:[#allocation10 + $0x10] sm:$0xff]   ;;  %v725_v32 = vld [vmem:[#allocation10 + $0x18] sm:$0xff]  }
  0x61   :  { %631 = vmatprep.subr.bf16.mxu1 %v877_v0  ;;  %648 = vmatpush3.bf16.msra.mxu0 %v714_v11  ;;  %v726_v33 = vld [vmem:[#allocation10 + $0x20] sm:$0xff]   ;;  %v727_v34 = vld [vmem:[#allocation10 + $0x28] sm:$0xff]   ;;  %v565_v35 = vld [vmem:[%s1084_s4] ss:$0 sm:$0xff] }
  0x62   :  { %649 = vmatprep.subr.bf16.mxu0 %v877_v0  ;;  %v728_v45 = vld [vmem:[#allocation10 + $0x30] sm:$0xff]   ;;  %v729_v46 = vld [vmem:[#allocation10 + $0x38] sm:$0xff]  }
  0x63   :  { %v574_v47 = vld [vmem:[%s1086_s6] ss:$0 sm:$0xff]  ;;  %s881_s6 = smov [#allocation11]  }
  0x64   :  { %632 = vmatpush3.bf16.msra.mxu1 %v708_v5  ;;  %v583_v59 = vld [vmem:[%s1088_s8] ss:$0 sm:$0xff]  ;;  %s547_s30 = sshll.u32 %s881_s6, 4  ;;  %s548_s30 = int_to_ptr.vmem [resolvable:$true] %s547_s30 }
  0x65   :  { %633 = vmatprep.subr.bf16.mxu1 %v877_v0  ;;  %650 = vmatpush3.bf16.msra.mxu0 %v715_v12  ;;  %s840_s8 = scalar_lea.vmem %s548_s30, 256  ;;  %p845_p13 = scmp.lt.s32.totalorder %s548_s30, %s548_s30 }
  0x66   :  { %651 = vmatprep.subr.bf16.mxu0 %v877_v0  ;;  %p841_p12 = scmp.ne.s32.totalorder %s548_s30, %s840_s8  ;;  %p846_p0 = scmp.lt.s32.totalorder %s840_s8, %s840_s8 }
  0x68   :  { %634 = vmatpush3.bf16.msra.mxu1 %v709_v6  ;;  %p847_p1 = por %p846_p0, %p845_p13 }
  0x69   :  { %635 = vmatprep.subr.bf16.mxu1 %v877_v0  ;;  %652 = vmatpush3.bf16.msra.mxu0 %v716_v13 }
  0x6a   :  { %653 = vmatprep.subr.bf16.mxu0 %v877_v0  ;;  %p848_p2 = pnand %p847_p1, %p841_p12 }
  0x6c   :  { %636 = vmatpush3.bf16.msra.mxu1 %v710_v7 }
  0x6d   :  { %637 = vmatprep.subr.bf16.mxu1 %v877_v0  ;;  %654 = vmatpush3.bf16.msra.mxu0 %v717_v14 }
  0x6e   :  { %655 = vmatprep.subr.bf16.mxu0 %v877_v0 }
  0x70   :  { %638 = vmatpush3.bf16.msra.mxu1 %v711_v8 }
  0x71   :  { %639 = vmatprep.subr.bf16.mxu1 %v877_v0  ;;  %656 = vmatpush3.bf16.msra.mxu0 %v718_v15 }
  0x72   :  { %657 = vmatprep.subr.bf16.mxu0 %v877_v0 }
  0x74   :  { %640 = vmatpush3.bf16.msra.mxu1 %v712_v9 }
  0x75   :  { %641 = vmatprep.subr.bf16.mxu1 %v877_v0  ;;  %658 = vmatpush3.bf16.msra.mxu0 %v719_v16 }
  0x76   :  { %659 = vmatprep.subr.bf16.mxu0 %v877_v0 }
  0x78   :  { %642 = vmatpush3.bf16.msra.mxu1 %v713_v10 }
  0x79   :  { %667 = vmatprep.subr.bf16.mxu1 %v877_v0  ;;  %660 = vmatpush3.bf16.msra.mxu0 %v720_v27 }
  0x7a   :  { %661 = vmatprep.subr.bf16.mxu0 %v877_v0 }
  0x7d   :  { %662 = vmatpush3.bf16.msra.mxu0 %v721_v28 }
 0x132   :  { %v162_v18 = vpop.f32.mrb[0].mxu0 }
 0x133   :  { %v163_v19 = vadd.f32 %v561_v17, %v162_v18  ;;  %v625_v20 = vpop.f32.mrb[1].mxu0 }
 0x134   :  { %v165_v21 = vpop.f32.mrb[2].mxu0 }
 0x135   :  { %v166_v22 = vadd.f32 %v561_v17, %v165_v21  ;;  %v626_v23 = vpop.f32.mrb[3].mxu0  ;;  %v169_v24 = vmax.f32 %v163_v19, 0.0 }
 0x137   :  { %v170_v25 = vmax.f32 %v166_v22, 0.0 }
 0x139   :  { %v171_v26 = vpack.c.bf16 %v170_v25, %v169_v24 }
 0x13b   :  { %644 = vmatmul.mubr.bf16.vlgmr.msra.gmra.mrb[0].mxu1 %v171_v26 }
 0x13c   :  { %683 = vmatprep.mubr.msk.bf16.mxu1 %vm878_vm0, %v877_v0  ;;  %668 = vmatpush3.bf16.msra.mxu1 %v722_v29 }
 0x13d   :  { %669 = vmatprep.subr.bf16.mxu1 %v877_v0 }
 0x140   :  { %670 = vmatpush3.bf16.msra.mxu1 %v723_v30 }
 0x141   :  { %671 = vmatprep.subr.bf16.mxu1 %v877_v0 }
 0x144   :  { %672 = vmatpush3.bf16.msra.mxu1 %v724_v31 }
 0x145   :  { %673 = vmatprep.subr.bf16.mxu1 %v877_v0 }
 0x148   :  { %674 = vmatpush3.bf16.msra.mxu1 %v725_v32 }
 0x149   :  { %675 = vmatprep.subr.bf16.mxu1 %v877_v0 }
 0x14c   :  { %676 = vmatpush3.bf16.msra.mxu1 %v726_v33 }
 0x14d   :  { %677 = vmatprep.subr.bf16.mxu1 %v877_v0 }
 0x150   :  { %678 = vmatpush3.bf16.msra.mxu1 %v727_v34 }
 0x151   :  { %679 = vmatprep.subr.bf16.mxu1 %v877_v0 }
 0x154   :  { %680 = vmatpush3.bf16.msra.mxu1 %v728_v45 }
 0x155   :  { %681 = vmatprep.subr.bf16.mxu1 %v877_v0 }
 0x158   :  { %682 = vmatpush3.bf16.msra.mxu1 %v729_v46 }
 0x20e   :  { %v277_v36 = vpop.f32.mrb[0].mxu1 }
 0x20f   :  { %v278_v37 = vadd.f32 %v565_v35, %v277_v36  ;;  %v645_v38 = vpop.f32.mrb[1].mxu1 }
 0x210   :  { %v280_v39 = vpop.f32.mrb[2].mxu1 }
 0x211   :  { %v281_v40 = vadd.f32 %v565_v35, %v280_v39  ;;  %v646_v41 = vpop.f32.mrb[3].mxu1  ;;  %v284_v42 = vmax.f32 %v278_v37, 0.0 }
 0x213   :  { %v285_v43 = vmax.f32 %v281_v40, 0.0 }
 0x215   :  { %v286_v44 = vpack.c.bf16 %v285_v43, %v284_v42 }
 0x217   :  { %664 = vmatmul.mubr.bf16.vlgmr.msra.gmra.mrb[4].mxu0 %v286_v44 }
 0x2ea   :  { %v392_v48 = vpop.f32.mrb[4].mxu0 }
 0x2eb   :  { %v393_v49 = vadd.f32 %v574_v47, %v392_v48  ;;  %v665_v50 = vpop.f32.mrb[5].mxu0 }
 0x2ec   :  { %v395_v51 = vpop.f32.mrb[6].mxu0 }
 0x2ed   :  { %v396_v52 = vadd.f32 %v574_v47, %v395_v51  ;;  %v666_v53 = vpop.f32.mrb[7].mxu0  ;;  %v399_v54 = vmax.f32 %v393_v49, 0.0 }
 0x2ef   :  { %v400_v55 = vmax.f32 %v396_v52, 0.0 }
 0x2f1   :  { %v401_v56 = vpack.c.bf16 %v400_v55, %v399_v54 }
 0x2f3   :  { %684 = vmatmul.mubr.bf16.vlgmr.msra.gmra.mrb[4].mxu1 %v401_v56 }
 0x3c6   :  { %v507_v60 = vpop.f32.mrb[4].mxu1 }
 0x3c7   :  { %v508_v61 = vadd.f32 %v583_v59, %v507_v60  ;;  %v685_v62 = vpop.f32.mrb[5].mxu1 }
 0x3c8   :  { %v510_v63 = vpop.f32.mrb[6].mxu1 }
 0x3c9   :  { %v511_v0 = vadd.f32 %v583_v59, %v510_v63  ;;  %516 = vperm.xlu0 %701, %v508_v61   ;;  %v686_v1 = vpop.f32.mrb[7].mxu1  ;;  %v526_v2 = vmul.f32 0.125, %v508_v61 }
 0x3cb   :  { %530 = vperm.xlu1 %702, %v526_v2   ;;  %v527_v3 = vmul.f32 0.125, %v511_v0 }
 0x3cd   :  { %521 = vperm.xlu0 %701, %v511_v0  }
 0x3cf   :  { %535 = vperm.xlu1 %702, %v527_v3  }
 0x3d1   :  { %703 = vset.pattern.permute.xlu0 %v880_v58 }
 0x448   :  { %v517_v4 = vpop.permute.xlu0 %516 }
 0x449   :  { %v524_v5 = vadd.f32 %v517_v4, %v508_v61 }
 0x44a   :  { %v531_v6 = vpop.permute.xlu1 %530 }
 0x44b   :  { %v538_v7 = vsub.f32 %v524_v5, %v531_v6 }
 0x44c   :  { %v522_v8 = vpop.permute.xlu0 %521 }
 0x44d   :  { %540 = vst [vmem:[#allocation11] sm:$0xff] %v538_v7  ;;  %v525_v9 = vadd.f32 %v522_v8, %v511_v0 }
 0x44e   :  { %v536_v10 = vpop.permute.xlu1 %535 }
 0x44f   :  { %v539_v11 = vsub.f32 %v525_v9, %v536_v10 }
 0x451   :  { %541 = vst [vmem:[#allocation11 + $0x8] sm:$0xff] %v539_v11 }
 0x452   :  { %851 = shalt.err (!%p848_p2)
}
 0x453   :  { %s852_s1 = scalar_lea.hbm %s1089_s9, 256 }
 0x454   :  { %p853_p3 = scmp.ne.s32.totalorder %s1089_s9, %s852_s1  ;;  %p856_p4 = scmp.lt.u32.totalorder %s852_s1, %s1089_s9 }
 0x456   :  { %p858_p5 = pnand %p856_p4, %p853_p3 }
 0x458   :  { %861 = shalt.err (!%p858_p5)
}
 0x459   :  { %s882_s16 = smov 128   ;;  %s883_s18 = smov 8  }
 0x45a   :  { %553 = dma.vmem_to_hbm [thread:$0]  %s548_s30, 256, %s1089_s9, [#allocation4], %s882_s16, %s882_s16, %s883_s18  }
 0x45b   :  { %868 = dma.done.wait [#allocation4], 256  }
 0x45c   :  { %869 = vsyncadd [#allocation4], 4294967040 }
 0x45d   :  { %557 = vsyncpa [#allocation3], 1 }
 0x45e   :  { %558 = vsyncpa [#allocation6], 1 }
 0x45f   :  { %559 = vsyncpa [#allocation9], 1 }
 0x460   :  { %560 = vsyncpa [#allocation4], 1 }

</bundles_post_ra>
